<compile_context>
chip_gen: v7x
topology: tpu7x:2x2x1
jax: 0.10.0
libtpu: 0.0.40
codegen_flags: <defaults>
</compile_context>

<pallas_src>
import jax
import jax.numpy as jnp
from jax.experimental import pallas as pl
from jax.experimental.pallas import tpu as pltpu


def _round_up(v, m):
    return ((v + m - 1) // m) * m


def _patch_embed_kernel(patches_ref, w_ref, pos_ref, o_ref):
    # patches_ref: (1, TN, K_pad)  bf16 tile of patch rows (trailing rows/cols
    #                              are zero padding -> inert through the matmul)
    # w_ref:       (K_pad, D_pad)  bf16 flattened conv weight (constant index map)
    # pos_ref:     (TN, D_pad)     bf16 pre-folded pos[1:]+bias table
    # o_ref:       (1, TN, D_pad)  out_dtype (bf16 by default)
    y = jnp.dot(patches_ref[0], w_ref[...],
                preferred_element_type=jnp.float32)        # MXU, f32 accumulate
    y = y + pos_ref[...].astype(jnp.float32)               # upcast add in f32
    o_ref[0] = y.astype(o_ref.dtype)


def patch_embedding(x, weight, bias, cls_token, pos_embedding, patch_size,
                    *, out_dtype=jnp.bfloat16):
    """x: (B, C, H, W).  Returns (B, n_patches + 1, embed_dim) like PyTorch.

    out_dtype defaults to bf16 (matmul operands are bf16 anyway); pass
    jnp.float32 to exactly match the module's output dtype at ~2x HBM cost.
    """
    B, C, H, W = x.shape
    P = patch_size
    Hp, Wp = H // P, W // P
    N = Hp * Wp                               # patch tokens (cls handled outside)
    D = weight.shape[0]
    K = C * P * P

    # ---- tiling / padding decisions -------------------------------------
    D_pad = _round_up(D, 128)                 # lane-dense output / weight cols
    K_pad = _round_up(K, 128)                 # aligned contraction dim
    TN_CAP = 512                              # token-tile cap (VMEM stays small)
    n_tiles = max(1, pl.cdiv(N, TN_CAP))
    # v7x has 2 TensorCores: make sure there are >=2 grid steps to shard.
    if B * n_tiles < 2 and N >= 16:
        n_tiles = 2
    TN = _round_up(pl.cdiv(N, n_tiles), 8)    # balanced split, multiple of 8
    N_pad = n_tiles * TN

    # ---- operand prep (layout only, no FLOPs) ----------------------------
    # Unfold NCHW into (B, N, K) patch rows ordered (C, P, P) to match the
    # flattened Conv2d weight; done in bf16 so the unavoidable HBM pass over x
    # moves half the bytes.  Only *trailing* zero padding is applied (fuses
    # into the same transpose copy; no prepend-pad materialization).
    xb = x.astype(jnp.bfloat16)
    patches = xb.reshape(B, C, Hp, P, Wp, P)
    patches = patches.transpose(0, 2, 4, 1, 3, 5).reshape(B, N, K)
    patches = jnp.pad(patches, ((0, 0), (0, N_pad - N), (0, K_pad - K)))

    w_mat = weight.reshape(D, K).T.astype(jnp.bfloat16)        # (K, D) bf16
    w_mat = jnp.pad(w_mat, ((0, K_pad - K), (0, D_pad - D)))   # (K_pad, D_pad)

    # Fold bias into the patch-token positional rows; store bf16 (halves the
    # largest per-step input stream), upcast to f32 inside the kernel.
    pos = pos_embedding.reshape(N + 1, D).astype(jnp.float32)
    pos_patch = pos[1:] + bias.astype(jnp.float32)             # (N, D) f32
    pos_patch = jnp.pad(pos_patch, ((0, N_pad - N), (0, D_pad - D)))
    pos_patch = pos_patch.astype(jnp.bfloat16)                 # (N_pad, D_pad)

    # ---- VMEM budget: actual double-buffer footprint, not physical size ---
    out_itemsize = jnp.dtype(out_dtype).itemsize
    buf_bytes = (2 * TN * K_pad * 2          # patches (double-buffered bf16)
                 + 2 * K_pad * D_pad * 2     # weight  (constant, fetched once)
                 + 2 * TN * D_pad * 2        # pos+bias (bf16)
                 + 2 * TN * D_pad * out_itemsize)   # output
    vmem_limit = int(min(48 * 1024 * 1024, max(8 * 1024 * 1024, 2 * buf_bytes)))

    out_p = pl.pallas_call(
        _patch_embed_kernel,
        out_shape=jax.ShapeDtypeStruct((B, N_pad, D_pad), out_dtype),
        grid_spec=pltpu.PrefetchScalarGridSpec(
            num_scalar_prefetch=0,
            # token tile OUTER, batch INNER: pos/weight block indices are
            # constant over the inner loop -> no redundant re-DMA across B.
            grid=(n_tiles, B),
            in_specs=[
                pl.BlockSpec((1, TN, K_pad), lambda j, b: (b, j, 0)),  # patches
                pl.BlockSpec((K_pad, D_pad), lambda j, b: (0, 0)),     # weight
                pl.BlockSpec((TN, D_pad), lambda j, b: (j, 0)),        # pos+bias
            ],
            out_specs=pl.BlockSpec((1, TN, D_pad), lambda j, b: (b, j, 0)),
        ),
        compiler_params=pltpu.CompilerParams(
            dimension_semantics=("parallel", "parallel"),
            vmem_limit_bytes=vmem_limit,
        ),
    )(patches, w_mat, pos_patch)

    # cls token row (D elements): cls + pos[0], computed wrapper-side.
    cls_row = (cls_token.reshape(D).astype(jnp.float32) + pos[0]).astype(out_dtype)
    cls_row = jnp.broadcast_to(cls_row.reshape(1, 1, D), (B, 1, D))
    # Assemble (B, N+1, D): one bf16 output-sized copy (see TODO above).
    return jnp.concatenate([cls_row, out_p[:, :N, :D]], axis=1)


def reference_patch_embedding(x, weight, bias, cls_token, pos_embedding, patch_size):
    """Pure-JAX (fp32) reference matching the PyTorch forward semantics."""
    B, C, H, W = x.shape
    P = patch_size
    D = weight.shape[0]
    y = jax.lax.conv_general_dilated(
        x, weight, window_strides=(P, P), padding="VALID",
        dimension_numbers=("NCHW", "OIHW", "NCHW"))          # (B, D, Hp, Wp)
    y = y + bias.reshape(1, D, 1, 1)
    y = y.reshape(B, D, -1).transpose(0, 2, 1)               # (B, N, D)
    cls = jnp.broadcast_to(cls_token, (B, 1, D))
    y = jnp.concatenate([cls, y], axis=1)                    # (B, N+1, D)
    return y + pos_embedding


if __name__ == "__main__":
    # Small ViT-like config: img 16x16, patch 4 -> 16 patches, 4 channels, D=32.
    img_size, patch_size, in_channels, embed_dim = 16, 4, 4, 32
    B = 2
    n_patches = (img_size // patch_size) ** 2

    key = jax.random.PRNGKey(0)
    kx, kw, kb, kc, kp = jax.random.split(key, 5)

    x = jax.random.normal(kx, (B, in_channels, img_size, img_size), jnp.float32)

    fan_in = in_channels * patch_size * patch_size
    bound = 1.0 / (fan_in ** 0.5)
    weight = jax.random.uniform(kw, (embed_dim, in_channels, patch_size, patch_size),
                                jnp.float32, -bound, bound)
    bias = jax.random.uniform(kb, (embed_dim,), jnp.float32, -bound, bound)
    cls_token = 0.02 * jax.random.normal(kc, (1, 1, embed_dim), jnp.float32)
    pos_embedding = 0.02 * jax.random.normal(kp, (1, n_patches + 1, embed_dim),
                                             jnp.float32)

    out = patch_embedding(x, weight, bias, cls_token, pos_embedding, patch_size)
    out = jax.block_until_ready(out)

    ref = reference_patch_embedding(x, weight, bias, cls_token, pos_embedding,
                                    patch_size)
    assert out.shape == (B, n_patches + 1, embed_dim), out.shape
    # bf16 matmul operands + bf16 output (f32 accumulate) -> bf16-level tolerance.
    assert jnp.allclose(out.astype(jnp.float32), ref, atol=2e-2, rtol=2e-2), \
        "mismatch vs reference"

    print("KERNEL_OK")
</pallas_src>

<mosaic_0001>
module attributes {stable_mosaic.version = 11 : i64} {
  func.func @_patch_embed_kernel(%arg0: i32, %arg1: i32, %arg2: memref<1x16x128xbf16, #tpu.memory_space<vmem>>, %arg3: memref<128x128xbf16, #tpu.memory_space<vmem>>, %arg4: memref<16x128xbf16, #tpu.memory_space<vmem>>, %arg5: memref<1x16x128xbf16, #tpu.memory_space<vmem>>) attributes {dimension_semantics = [#tpu.dimension_semantics<parallel>, #tpu.dimension_semantics<parallel>], iteration_bounds = array<i64: 1, 2>, scalar_prefetch = 0 : i64, scratch_operands = 0 : i64, tpu.core_type = #tpu.core_type<tc>, window_params = [{transform_indices = @transform_0, window_bounds = array<i64: 1, 16, 128>}, {pipeline_mode = #tpu.pipeline_mode<synchronous>, transform_indices = @transform_1, window_bounds = array<i64: 128, 128>}, {transform_indices = @transform_2, window_bounds = array<i64: 16, 128>}, {transform_indices = @transform_3, window_bounds = array<i64: 1, 16, 128>}]} {
    %c0 = arith.constant 0 : index
    %c0_0 = arith.constant 0 : index
    %c0_1 = arith.constant 0 : index
    %0 = vector.load %arg2[%c0, %c0_0, %c0_1] : memref<1x16x128xbf16, #tpu.memory_space<vmem>>, vector<1x16x128xbf16>
    %1 = vector.shape_cast %0 : vector<1x16x128xbf16> to vector<16x128xbf16>
    %c0_2 = arith.constant 0 : index
    %c0_3 = arith.constant 0 : index
    %2 = vector.load %arg3[%c0_2, %c0_3] : memref<128x128xbf16, #tpu.memory_space<vmem>>, vector<128x128xbf16>
    %cst = arith.constant dense<0.000000e+00> : vector<16x128xf32>
    %3 = tpu.matmul %1, %2, %cst {dimension_numbers = #tpu.dot_dimension_numbers<[1], [0], [0], [1], [0, 0, 1, 1], [], []>} : vector<16x128xbf16>, vector<128x128xbf16>, vector<16x128xf32> -> vector<16x128xf32>
    %c0_4 = arith.constant 0 : index
    %c0_5 = arith.constant 0 : index
    %4 = vector.load %arg4[%c0_4, %c0_5] : memref<16x128xbf16, #tpu.memory_space<vmem>>, vector<16x128xbf16>
    %5 = arith.extf %4 : vector<16x128xbf16> to vector<16x128xf32>
    %6 = arith.addf %3, %5 : vector<16x128xf32>
    %7 = arith.truncf %6 : vector<16x128xf32> to vector<16x128xbf16>
    %c0_6 = arith.constant 0 : index
    %c0_7 = arith.constant 0 : index
    %c0_8 = arith.constant 0 : index
    %8 = vector.load %arg5[%c0_6, %c0_7, %c0_8] : memref<1x16x128xbf16, #tpu.memory_space<vmem>>, vector<1x16x128xbf16>
    %9 = vector.shape_cast %8 : vector<1x16x128xbf16> to vector<16x128xbf16>
    %10 = vector.shape_cast %7 : vector<16x128xbf16> to vector<1x16x128xbf16>
    tpu.vector_store %arg5[%c0_6, %c0_7, %c0_8], %10 {strides = array<i32>} : memref<1x16x128xbf16, #tpu.memory_space<vmem>>, vector<1x16x128xbf16>,
    return
  }
  func.func @transform_0(%arg0: i32, %arg1: i32) -> (i32, i32, i32) {
    %c0_i32 = arith.constant 0 : i32
    %c0_i32_0 = arith.constant 0 : i32
    return %arg1, %arg0, %c0_i32 : i32, i32, i32
  }
  func.func @transform_1(%arg0: i32, %arg1: i32) -> (i32, i32) {
    %c0_i32 = arith.constant 0 : i32
    %c0_i32_0 = arith.constant 0 : i32
    %c0_i32_1 = arith.constant 0 : i32
    return %c0_i32, %c0_i32_0 : i32, i32
  }
  func.func @transform_2(%arg0: i32, %arg1: i32) -> (i32, i32) {
    %c0_i32 = arith.constant 0 : i32
    %c0_i32_0 = arith.constant 0 : i32
    return %arg0, %c0_i32 : i32, i32
  }
  func.func @transform_3(%arg0: i32, %arg1: i32) -> (i32, i32, i32) {
    %c0_i32 = arith.constant 0 : i32
    %c0_i32_0 = arith.constant 0 : i32
    return %arg1, %arg0, %c0_i32 : i32, i32, i32
  }
}

</mosaic_0001>

<bundles_post_ra>
// kernel: tpu_custom_call.1
= control target key start
LH: loop header
LB: loop body
LE: loop exit
PB: predicated region body
PF: predicated region fallthrough
CT: control target
= control target key end

     0   :  { %8 = vsyncpa [#allocation3], 0  ;;  %s1144_s0 = inlined_call_operand.hbm [shape: bf16[2,16,128], index: 0, kind: input, shape index: {}]   ;;  %s1145_s1 = inlined_call_operand.hbm [shape: bf16[128,128], index: 1, kind: input, shape index: {}]   ;;  %s1146_s2 = inlined_call_operand.hbm [shape: bf16[16,128], index: 2, kind: input, shape index: {}]   ;;  %s1147_s3 = inlined_call_operand.hbm [shape: bf16[2,16,128], index: 3, kind: output, shape index: {}]  }
   0x1   :  { %10 = vsyncpa [#allocation3 + $0x1], 0 }
   0x2   :  { %11 = vsyncpa [#allocation6], 0 }
   0x3   :  { %12 = vsyncpa [#allocation4], 0 }
   0x4   :  { %14 = vsyncpa [#allocation4 + $0x1], 0  ;;  %s873_s12 = smov 0   ;;  %s875_s13 = smov 0  }
   0x5   :  { %s877_s14 = smov 0   ;;  %s879_s15 = smov 0  }
   0x6   :  { %s881_s16 = smov 0   ;;  %s883_s17 = smov 0  }
   0x7 LB: > { %s499_s18 = sadd.s32 4294967295, %s841_s17   ;;  %s500_s19 = sadd.s32 4294967294, %s841_s17   ;;  %s841_s17 = sphi %s883_s17, %s20_s17   ;;  %s837_s16 = sphi %s881_s16, %s1169_s16   ;;  %s833_s15 = sphi %s879_s15, %s1168_s15   ;;  %s829_s14 = sphi %s877_s14, %s1167_s14   ;;  %s825_s13 = sphi %s875_s13, %s1166_s13   ;;  %s821_s12 = sphi %s873_s12, %s1165_s12  }
   0x8   : > { %p54_p0 = scmp.ne.s32.totalorder %s825_s13, %s821_s12  ;;  %p907_p1 = scmp.eq.s32.totalorder %s499_s18, 0 }
   0x9   : > { %p911_p2 = scmp.eq.s32.totalorder %s499_s18, 1  ;;  %p133_p3 = scmp.eq.s32.totalorder %s500_s19, 1 }
   0xa   : > { %s1152_s20 = scalar_select %p907_p1, 1, 0 }
   0xb   : > { %p917_p4 = por %p907_p1, %p54_p0  ;;  %p501_p5 = scmp.ge.s32.totalorder %s841_s17, 1 }
   0xc   : > { %p922_p6 = por %p133_p3, %p54_p0  ;;  %p140_p7 = scmp.lt.s32.totalorder %s841_s17, 3 }
   0xd   : > { %s1154_s22 = scalar_select %p917_p4, 1, 0 }
   0xe   : > { %s1155_s23 = scalar_select %p922_p6, 1, 0 }
   0xf   : > { %p927_p8 = pnand %p501_p5, %p140_p7  ;;  %s843_s25 = smov [#allocation5]  }
  0x10   : > { %s152_s26 = sshll.u32 %s843_s25, 4  ;;  %s844_s28 = smov [#allocation7]   ;;  %s931_s26 = int_to_ptr.vmem [resolvable:$true] %s152_s26 }
  0x11   : > { %p583_p9 = pneg %p927_p8  ;;  %s168_s29 = sshll.u32 %s844_s28, 4  ;;  %s942_s29 = int_to_ptr.vmem [resolvable:$true] %s168_s29 }
  0x12   : > { %s669_s5 = scalar_lea.hbm %s1145_s1, 1024 }
  0x13   : > { %p938_p11 = pnand %p583_p9, %p907_p1  ;;  %p670_p12 = scmp.ne.s32.totalorder %s1145_s1, %s669_s5 }
  0x14   : > { %p676_p5 = scmp.lt.u32.totalorder %s669_s5, %s1145_s1 }
  0x15   : > { %p671_p13 = pneg %p938_p11 }
  0x17   : > { %p672_p0 = pnand %p671_p13, %p670_p12 }
  0x19   : > { %p673_p3 = pneg %p672_p0 }
  0x1b   : > { %p678_p7 = pnand %p676_p5, %p673_p3 }
  0x1d   : > { %681 = shalt.err (!%p678_p7)
}
  0x1e   : > { %s682_s10 = scalar_lea.vmem %s931_s26, 1024  ;;  %p690_p1 = scmp.lt.s32.totalorder %s931_s26, %s931_s26 }
  0x1f   : > { %p683_p9 = scmp.ne.s32.totalorder %s931_s26, %s682_s10  ;;  %p691_p12 = scmp.lt.s32.totalorder %s682_s10, %s682_s10 }
  0x21   : > { %p685_p10 = pnand %p683_p9, %p671_p13  ;;  %p692_p0 = por %p691_p12, %p690_p1 }
  0x23   : > { %p686_p6 = pneg %p685_p10 }
  0x25   : > { %p693_p4 = pnand %p692_p0, %p686_p6 }
  0x27   : > { %696 = shalt.err (!%p693_p4)
}
  0x28   : > { %s845_s11 = smov 64   ;;  %s846_s18 = smov 4  }
  0x29   : > { %586 = dma.hbm_to_vmem [thread:$0]  (!%p938_p11), %s1145_s1, 1024, %s931_s26, [#allocation6], %s845_s11, %s845_s11, %s846_s18  }
  0x2a   : > { %s697_s4 = scalar_lea.hbm %s1146_s2, 128 }
  0x2b   : > { %p698_p1 = scmp.ne.s32.totalorder %s1146_s2, %s697_s4  ;;  %p704_p10 = scmp.lt.u32.totalorder %s697_s4, %s1146_s2 }
  0x2d   : > { %p700_p4 = pnand %p698_p1, %p671_p13 }
  0x2f   : > { %p701_p6 = pneg %p700_p4 }
  0x31   : > { %p706_p3 = pnand %p704_p10, %p701_p6 }
  0x33   : > { %709 = shalt.err (!%p706_p3)
}
  0x34   : > { %s710_s26 = scalar_lea.vmem %s942_s29, 128  ;;  %p718_p12 = scmp.lt.s32.totalorder %s942_s29, %s942_s29 }
  0x35   : > { %p711_p5 = scmp.ne.s32.totalorder %s942_s29, %s710_s26  ;;  %p719_p0 = scmp.lt.s32.totalorder %s710_s26, %s710_s26 }
  0x37   : > { %p713_p7 = pnand %p711_p5, %p671_p13  ;;  %p720_p1 = por %p719_p0, %p718_p12 }
  0x39   : > { %p714_p9 = pneg %p713_p7 }
  0x3b   : > { %p721_p4 = pnand %p720_p1, %p714_p9 }
  0x3d   : > { %724 = shalt.err (!%p721_p4)
}
  0x3e   : > { %589 = dma.hbm_to_vmem [thread:$0]  (!%p938_p11), %s1146_s2, 128, %s942_s29, [#allocation6], %s845_s11, %s845_s11, %s846_s18  }
  0x3f   : > { %s29_s27 = sadd.s32 1, %s837_s16  ;;  %s41_s19 = sadd.s32 1, %s829_s14 }
  0x40   : > { %p30_p13 = scmp.ge.s32.totalorder %s29_s27, 2  ;;  %p48_p6 = scmp.ne.s32.totalorder %s829_s14, %s825_s13 }
  0x41   : > { %p49_p10 = scmp.eq.s32.totalorder %s841_s17, 0  ;;  %p600_p3 = scmp.lt.s32.totalorder %s841_s17, 2 }
  0x42   : > { %s1171_s27 = smov (%p30_p13, %s29_s27), 0  ;;  %p1012_p7 = por %p911_p2, %p48_p6 }
  0x43   : > { %p50_p5 = por %p49_p10, %p48_p6  ;;  %s36_s28 = ssub.s32 %s837_s16, %s1171_s27 }
  0x44   : > { %s1158_s25 = scalar_select %p1012_p7, 1, 0 }
  0x45   : > { %s182_s30 = sand.u32 1, %s829_s14   ;;  %p39_p9 = scmp.eq.s32.totalorder %s36_s28, 0 }
  0x46   : > { %s505_s29 = sshll.u32 %s182_s30, 3  ;;  %s529_s4 = sshll.u32 %s837_s16, 7 }
  0x47   : > { %s1021_s5 = scalar_select %p39_p9, %s829_s14, %s41_s19  }
  0x48   : > { %s1026_s8 = scalar_lea.hbm %s1144_s0, %s529_s4  ;;  %s186_s21 = scalar_lea.vmem [#allocation2], %s505_s29 }
  0x49   : > { %s195_s26 = sshll.u32 %s186_s21, 4  ;;  %p1030_p2 = pnand %p600_p3, %p50_p5  ;;  %s1034_s26 = int_to_ptr.vmem [resolvable:$true] %s195_s26 }
  0x4a   : > { %s1036_s10 = scalar_lea.sflag [#allocation3], %s182_s30  ;;  %s725_s19 = scalar_lea.hbm %s1026_s8, 128 }
  0x4b   : > { %p726_p11 = scmp.ne.s32.totalorder %s1026_s8, %s725_s19  ;;  %p727_p12 = pneg %p1030_p2 }
  0x4c   : > { %s730_s4 = scalar_lea.hbm %s1144_s0, 256  ;;  %p731_p4 = scmp.lt.u32.totalorder %s1026_s8, %s1144_s0 }
  0x4d   : > { %p728_p0 = pnand %p727_p12, %p726_p11  ;;  %p732_p13 = scmp.lt.u32.totalorder %s730_s4, %s725_s19 }
  0x4e   : > { %p734_p10 = scmp.lt.u32.totalorder %s725_s19, %s1026_s8 }
  0x4f   : > { %p729_p1 = pneg %p728_p0  ;;  %p733_p6 = por %p732_p13, %p731_p4 }
  0x51   : > { %p735_p3 = por %p734_p10, %p733_p6 }
  0x53   : > { %p736_p5 = pnand %p735_p3, %p729_p1 }
  0x55   : > { %739 = shalt.err (!%p736_p5)
}
  0x56   : > { %s740_s30 = scalar_lea.vmem %s1034_s26, 128  ;;  %s847_s21 = smov [#allocation2]  }
  0x57   : > { %p741_p9 = scmp.ne.s32.totalorder %s1034_s26, %s740_s30  ;;  %s745_s28 = sshll.u32 %s847_s21, 4  ;;  %s746_s28 = int_to_ptr.vmem [resolvable:$false] %s745_s28 }
  0x58   : > { %s747_s29 = scalar_lea.vmem %s746_s28, 256  ;;  %p748_p7 = scmp.lt.s32.totalorder %s1034_s26, %s746_s28 }
  0x59   : > { %p743_p11 = pnand %p741_p9, %p727_p12  ;;  %p749_p4 = scmp.lt.s32.totalorder %s747_s29, %s740_s30 }
  0x5b   : > { %p744_p0 = pneg %p743_p11  ;;  %p750_p13 = por %p749_p4, %p748_p7 }
  0x5d   : > { %p751_p6 = pnand %p750_p13, %p744_p0 }
  0x5f   : > { %754 = shalt.err (!%p751_p6)
}
  0x60   : > { %593 = dma.hbm_to_vmem [thread:$0]  (!%p1030_p2), %s1026_s8, 128, %s1034_s26, %s1036_s10, %s845_s11, %s845_s11, %s846_s18  }
  0x61   : > { %207 = sbr.rel (%p927_p8) target bundleno = 374 (0x176), region = 32  ;;  %s1070_s19 = sand.u32 (!%p927_p8), 1, %s825_s13  }
  0x62   : > { %s509_s4 = sshll.u32 (!%p927_p8), %s1070_s19, 3  ;;  %s210_s6 = scalar_lea.sflag (!%p927_p8), [#allocation3], %s1070_s19 }
  0x63   : > { %s1076_s9 = scalar_lea.vmem (!%p927_p8), [#allocation2], %s509_s4  ;;  %p1160_p7 = scmp.ne.s32.totalorder (!%p927_p8), %s1154_s22, 0 }
  0x68   : > { %808 = dma.done.wait (%p1160_p7), %s210_s6, 128  }
  0x69   : > { %810 = vsyncadd (%p1160_p7), %s210_s6, 4294967168  ;;  %p1161_p2 = scmp.ne.s32.totalorder %s1152_s20, 0 }
  0x6b   : > { %812 = dma.done.wait (%p1161_p2), [#allocation6], 1152  }
  0x6c   : > { %814 = vsyncadd (%p1161_p2), [#allocation6], 4294966144  ;;  %v848_v0 = vmov 0.0   ;;  %vm849_vm0 = vmmov 0   ;;  %v660_v1 = vld [vmem:[#allocation5] sm:$0xff]   ;;  %v661_v2 = vld [vmem:[#allocation5 + $0x8] sm:$0xff]  }
  0x6d   : > { %551 = vmatprep.subr.bf16.mxu0 %v848_v0  ;;  %567 = vmatprep.mubr.msk.bf16.mxu0 %vm849_vm0, %v848_v0  ;;  %v662_v3 = vld [vmem:[#allocation5 + $0x10] sm:$0xff]   ;;  %v663_v4 = vld [vmem:[#allocation5 + $0x18] sm:$0xff]   ;;  %v664_v5 = vld [vmem:[#allocation5 + $0x20] sm:$0xff]   ;;  %s243_s20 = scalar_lea.vmem [#allocation8], %s509_s4  ;;  %s532_s24 = sshll.u32 %s833_s15, 7 }
  0x6e   : > { %552 = vmatpush3.bf16.msra.mxu0 %v660_v1  ;;  %v665_v6 = vld [vmem:[#allocation5 + $0x28] sm:$0xff]   ;;  %v666_v7 = vld [vmem:[#allocation5 + $0x30] sm:$0xff]   ;;  %v667_v8 = vld [vmem:[#allocation5 + $0x38] sm:$0xff]   ;;  %s391_s22 = sshll.u32 %s243_s20, 4  ;;  %s1095_s8 = scalar_lea.hbm %s1147_s3, %s532_s24  ;;  %s1090_s22 = int_to_ptr.vmem [resolvable:$true] %s391_s22 }
  0x6f   : > { %553 = vmatprep.subr.bf16.mxu0 %v848_v0  ;;  %v668_v9 = vld [vmem:[%s1076_s9] sm:$0xff]   ;;  %v534_v10 = vld [vmem:[#allocation7] sm:$0xff]   ;;  %s376_s26 = scalar_lea.sflag [#allocation4], %s1070_s19  ;;  %s755_s10 = scalar_lea.vmem %s1090_s22, 128 }
  0x70   : > { %v535_v11 = vunpack.c.l.bf16 %v534_v10  ;;  %v536_v12 = vunpack.c.h.bf16 %v534_v10  ;;  %p756_p8 = scmp.ne.s32.totalorder %s1090_s22, %s755_s10  ;;  %p1162_p12 = scmp.ne.s32.totalorder %s1158_s25, 0 }
  0x71   : > { %s850_s15 = smov [#allocation8]  }
  0x72   : > { %554 = vmatpush3.bf16.msra.mxu0 %v661_v2  ;;  %p757_p1 = pnand %p756_p8, %p1162_p12  ;;  %s759_s7 = sshll.u32 %s850_s15, 4  ;;  %s760_s7 = int_to_ptr.vmem [resolvable:$false] %s759_s7 }
  0x73   : > { %555 = vmatprep.subr.bf16.mxu0 %v848_v0  ;;  %s761_s30 = scalar_lea.vmem %s760_s7, 256  ;;  %p762_p3 = scmp.lt.s32.totalorder %s1090_s22, %s760_s7 }
  0x74   : > { %p758_p10 = pneg %p757_p1  ;;  %p763_p5 = scmp.lt.s32.totalorder %s761_s30, %s755_s10 }
  0x76   : > { %556 = vmatpush3.bf16.msra.mxu0 %v662_v3  ;;  %p764_p9 = por %p763_p5, %p762_p3 }
  0x77   : > { %557 = vmatprep.subr.bf16.mxu0 %v848_v0 }
  0x78   : > { %p765_p11 = pnand %p764_p9, %p758_p10 }
  0x7a   : > { %558 = vmatpush3.bf16.msra.mxu0 %v663_v4 }
  0x7b   : > { %559 = vmatprep.subr.bf16.mxu0 %v848_v0 }
  0x7e   : > { %560 = vmatpush3.bf16.msra.mxu0 %v664_v5 }
  0x7f   : > { %561 = vmatprep.subr.bf16.mxu0 %v848_v0 }
  0x82   : > { %562 = vmatpush3.bf16.msra.mxu0 %v665_v6 }
  0x83   : > { %563 = vmatprep.subr.bf16.mxu0 %v848_v0 }
  0x86   : > { %564 = vmatpush3.bf16.msra.mxu0 %v666_v7 }
  0x87   : > { %565 = vmatprep.subr.bf16.mxu0 %v848_v0 }
  0x8a   : > { %566 = vmatpush3.bf16.msra.mxu0 %v667_v8 }
  0x8d   : > { %568 = vmatmul.mubr.bf16.vlgmr.msra.gmra.mrb[0].mxu0 %v668_v9 }
 0x160   : > { %v358_v13 = vpop.f32.mrb[0].mxu0 }
 0x161   : > { %v569_v14 = vpop.f32.mrb[1].mxu0  ;;  %v359_v16 = vadd.f32 %v535_v11, %v358_v13 }
 0x162   : > { %v361_v15 = vpop.f32.mrb[2].mxu0 }
 0x163   : > { %v362_v17 = vadd.f32 %v536_v12, %v361_v15  ;;  %v570_v18 = vpop.f32.mrb[3].mxu0 }
 0x165   : > { %v540_v19 = vpack.c.bf16 %v362_v17, %v359_v16 }
 0x167   : > { %541 = vst [vmem:[%s243_s20] sm:$0xff] %v540_v19  }
 0x168   : > { %768 = shalt.err (!%p765_p11)
}
 0x169   : > { %s769_s21 = scalar_lea.hbm %s1095_s8, 128  ;;  %s773_s4 = scalar_lea.hbm %s1147_s3, 256 }
 0x16a   : > { %p770_p0 = scmp.ne.s32.totalorder %s1095_s8, %s769_s21  ;;  %p774_p6 = scmp.lt.u32.totalorder %s1095_s8, %s1147_s3 }
 0x16b   : > { %p775_p7 = scmp.lt.u32.totalorder %s773_s4, %s769_s21  ;;  %p777_p8 = scmp.lt.u32.totalorder %s769_s21, %s1095_s8 }
 0x16c   : > { %p771_p4 = pnand %p770_p0, %p1162_p12 }
 0x16d   : > { %p776_p2 = por %p775_p7, %p774_p6 }
 0x16e   : > { %p772_p13 = pneg %p771_p4 }
 0x16f   : > { %p778_p1 = por %p777_p8, %p776_p2 }
 0x171   : > { %p779_p10 = pnand %p778_p1, %p772_p13 }
 0x173   : > { %782 = shalt.err (!%p779_p10)
}
 0x174   : > { %s851_s20 = smov 64   ;;  %s852_s24 = smov 4  }
 0x175   : > { %581 = dma.vmem_to_hbm [thread:$0]  (%p1162_p12), %s1090_s22, 128, %s1095_s8, %s376_s26, %s851_s20, %s851_s20, %s852_s24  }
 0x176 PF: > { %s406_s11 = sand.u32 1, %s821_s12   ;;  %p1163_p3 = scmp.ne.s32.totalorder %s1155_s23, 0 }
 0x177   : > { %p1164_p5 = scmp.ge.s32.totalorder %s841_s17, 2  ;;  %s407_s18 = scalar_lea.sflag [#allocation4], %s406_s11 }
 0x179   : > { %p595_p9 = pnand %p1164_p5, %p1163_p3 }
 0x17b   : > { %816 = dma.done.wait (!%p595_p9), %s407_s18, 128  }
 0x17c   : > { %818 = vsyncadd (!%p595_p9), %s407_s18, 4294967168  ;;  %s20_s17 = sadd.s32 1, %s841_s17   ;;  %s1165_s12 = smov %s825_s13 }
 0x17d   : > { %p17_p11 = scmp.ge.s32.totalorder %s20_s17, 4   ;;  %s1166_s13 = smov %s829_s14 }
 0x17e   : > { %s1167_s14 = smov %s1021_s5  ;;  %s1168_s15 = smov %s837_s16 }
 0x17f   : > { %s1169_s16 = smov %s1171_s27  ;;  %19 = sbr.rel (!%p17_p11) target bundleno = 7 (0x7), region = 86 }
 0x186   :  { %412 = vsyncpa [#allocation3], 1 }
 0x187   :  { %414 = vsyncpa [#allocation3 + $0x1], 1 }
 0x188   :  { %415 = vsyncpa [#allocation6], 1 }
 0x189   :  { %416 = vsyncpa [#allocation4], 1 }
 0x18a   :  { %418 = vsyncpa [#allocation4 + $0x1], 1 }

</bundles_post_ra>
